<compile_context>
chip_gen: v6e
topology: v6e:2x2x1
jax: 0.10.0
libtpu: 0.0.40
codegen_flags: <defaults>
</compile_context>

<pallas_src>
import functools

import jax
import jax.numpy as jnp
from jax.experimental import pallas as pl
from jax.experimental.pallas import tpu as pltpu


def _head_enc_kernel(x_ref, w_ref, o_ref, *, softmax_dtype):
    # x_ref: (Bblk, T, C)  block of batch elements (model dtype)
    # w_ref: (3, C, H)     stacked, pre-transposed weights, order [q*scale | k | v]
    # o_ref: (Bblk, T, H)
    x = x_ref[...]
    mxu_dtype = x.dtype

    # Three projections from leading-axis weight planes (leading-axis slices are free;
    # no lane-offset slicing of a fused qkv result inside a single 128-lane vreg).
    def proj(g):
        return jnp.einsum("btc,ch->bth", x, w_ref[g],
                          preferred_element_type=jnp.float32)

    q = proj(0).astype(mxu_dtype)   # 1/sqrt(C) already folded into the q weight
    k = proj(1).astype(mxu_dtype)
    v = proj(2).astype(mxu_dtype)

    # Attention scores: contract the last (lane) dims of q and k (no explicit k.T),
    # narrow MXU operands, f32 accumulation.
    s = jnp.einsum("bqh,bkh->bqk", q, k,
                   preferred_element_type=jnp.float32)        # (Bblk, T, T) f32

    # Numerically stable softmax with DEFERRED normalization: only exp + rowsum here;
    # the divide happens on the (T, H) output instead of the (T, T) prob matrix.
    s = s - jnp.max(s, axis=-1, keepdims=True)
    p = jnp.exp(s.astype(softmax_dtype))                      # bf16 EUP on v6e/v7x bf16 runs
    l = jnp.sum(p.astype(jnp.float32), axis=-1, keepdims=True)  # f32 row sums

    # Dropout: identity (eval / inference mode).

    acc = jnp.einsum("bqk,bkh->bqh", p.astype(mxu_dtype), v,
                     preferred_element_type=jnp.float32)      # (Bblk, T, H) f32
    out = acc * pl.reciprocal(l, approx=True)                 # EUP reciprocal, ~free
    o_ref[...] = out.astype(o_ref.dtype)


def _device_kind():
    try:
        return jax.devices()[0].device_kind.lower()
    except Exception:  # pragma: no cover - e.g. no devices during tracing tools
        return ""


def _per_step_bytes(bb, T, C, H, itemsize, narrow_softmax):
    """Rough per-grid-step VMEM working set for the kernel above."""
    io = 2 * bb * T * (C + H) * itemsize          # double-buffered x + out blocks
    w = 2 * 3 * C * H * itemsize                  # (double-buffered) weight slab
    p_bytes = 2 if narrow_softmax else 4
    work = bb * (3 * T * H * 4                    # q, k, v (f32 accumulators)
                 + T * T * 4                      # scores (f32)
                 + T * T * p_bytes                # unnormalized probs
                 + T * H * 4                      # output accumulator (f32)
                 + 2 * T * 4)                     # row max + row sum
    return io + w + work


def _choose_block_b(B, T, C, H, itemsize, *, budget_bytes, min_steps, narrow_softmax):
    """Largest divisor of B that fits the VMEM budget AND leaves >= min_steps grid steps."""
    best = 1
    for bb in range(1, B + 1):
        if B % bb != 0:
            continue
        if B // bb < min_steps:
            continue
        if _per_step_bytes(bb, T, C, H, itemsize, narrow_softmax) <= budget_bytes:
            best = bb
    return best


def head_enc_forward(x, w_key, w_query, w_value):
    """x: (B, T, C); w_*: (head_size, C) PyTorch layout. Returns (B, T, head_size)."""
    B, T, C = x.shape
    H = w_key.shape[0]
    scale = float(C) ** -0.5
    itemsize = x.dtype.itemsize

    kind = _device_kind()
    is_v7 = "v7" in kind
    is_pre_v6 = any(tag in kind for tag in ("v2", "v3", "v4", "v5"))

    # bf16 exp only on chips with bf16 VPU/EUP (v6e/v7x) and only for bf16 models;
    # softmax stays f32 on v5e-and-older and for f32 inputs.
    narrow_softmax = (x.dtype == jnp.bfloat16) and not is_pre_v6
    softmax_dtype = jnp.bfloat16 if narrow_softmax else jnp.float32

    # One-time layout plumbing in XLA: fold the score scale into the query weight,
    # pre-transpose each weight to (C, H), and stack as (3, C, H), order [q | k | v].
    w_qkv = jnp.stack(
        [(w_query * scale).T, w_key.T, w_value.T], axis=0).astype(x.dtype)

    # Generation-aware VMEM policy.
    physical_vmem = (64 << 20) if is_v7 else (128 << 20)
    budget_bytes = (8 << 20) if is_v7 else (32 << 20)
    min_steps = 2 if B >= 2 else 1   # >= 2 steps: megacore sharding (v7x) + pipelining

    # Guard: the dense (T, T) score tile must fit even at block_b = 1.
    if _per_step_bytes(1, T, C, H, itemsize, narrow_softmax) > int(0.75 * physical_vmem):
        # TODO(synk): KV-tiled online-softmax (flash-style) path for very long T.
        raise ValueError(
            "Sequence length too large for the dense (T, T) score tile on this chip; "
            "a KV-tiled online-softmax kernel is required.")

    block_b = _choose_block_b(B, T, C, H, itemsize,
                              budget_bytes=budget_bytes,
                              min_steps=min_steps,
                              narrow_softmax=narrow_softmax)
    grid_b = B // block_b
    per_step = _per_step_bytes(block_b, T, C, H, itemsize, narrow_softmax)

    vmem_limit = int(min(int(0.75 * physical_vmem),
                         max(16 << 20, 2 * per_step)))

    kernel = functools.partial(_head_enc_kernel, softmax_dtype=softmax_dtype)

    # NOTE: the weight BlockSpec index_map is constant across the grid; single-buffering
    # it (pipeline_mode=pl.Buffered(1)) would save a tiny amount of VMEM headroom.
    return pl.pallas_call(
        kernel,
        out_shape=jax.ShapeDtypeStruct((B, T, H), x.dtype),
        grid_spec=pltpu.PrefetchScalarGridSpec(
            num_scalar_prefetch=0,
            grid=(grid_b,),
            in_specs=[
                pl.BlockSpec((block_b, T, C), lambda b: (b, 0, 0)),  # x batch slab
                pl.BlockSpec((3, C, H), lambda b: (0, 0, 0)),        # stacked weights
            ],
            out_specs=pl.BlockSpec((block_b, T, H), lambda b: (b, 0, 0)),
        ),
        compiler_params=pltpu.CompilerParams(
            dimension_semantics=("parallel",),
            vmem_limit_bytes=vmem_limit,
        ),
    )(x, w_qkv)


def head_enc_reference(x, w_key, w_query, w_value):
    """Plain-JAX reference mirroring the PyTorch forward (eval mode)."""
    C = x.shape[-1]
    k = jnp.einsum("btc,hc->bth", x, w_key)
    q = jnp.einsum("btc,hc->bth", x, w_query)
    v = jnp.einsum("btc,hc->bth", x, w_value)
    wei = jnp.einsum("bth,bsh->bts", q, k) * (C ** -0.5)
    wei = jax.nn.softmax(wei, axis=-1)
    return jnp.einsum("bts,bsh->bth", wei, v)


if __name__ == "__main__":
    # Small shapes consistent with the module: batch=2, seq=8, n_embd=32, head_size=16.
    B, T, C, H = 2, 8, 32, 16

    key = jax.random.PRNGKey(0)
    kx, kk, kq, kv = jax.random.split(key, 4)

    x = jax.random.normal(kx, (B, T, C), dtype=jnp.float32)
    # Deterministic "Linear(bias=False)" weights, PyTorch layout (out, in).
    w_key = jax.random.normal(kk, (H, C), dtype=jnp.float32) * (C ** -0.5)
    w_query = jax.random.normal(kq, (H, C), dtype=jnp.float32) * (C ** -0.5)
    w_value = jax.random.normal(kv, (H, C), dtype=jnp.float32) * (C ** -0.5)

    out = head_enc_forward(x, w_key, w_query, w_value)
    out = jax.block_until_ready(out)

    ref = head_enc_reference(x, w_key, w_query, w_value)
    assert out.shape == (B, T, H)
    # approx=True reciprocal in the softmax -> allow ~1e-3-level relative error.
    assert jnp.allclose(out, ref, atol=3e-3, rtol=3e-3), "mismatch vs reference"

    print("KERNEL_OK")
</pallas_src>

<mosaic_0001>
module attributes {stable_mosaic.version = 11 : i64} {
  func.func @_head_enc_kernel(%arg0: i32, %arg1: memref<1x8x32xf32, #tpu.memory_space<vmem>>, %arg2: memref<3x32x16xf32, #tpu.memory_space<vmem>>, %arg3: memref<1x8x16xf32, #tpu.memory_space<vmem>>) attributes {dimension_semantics = [#tpu.dimension_semantics<parallel>], iteration_bounds = array<i64: 2>, scalar_prefetch = 0 : i64, scratch_operands = 0 : i64, tpu.core_type = #tpu.core_type<tc>, window_params = [{transform_indices = @transform_0, window_bounds = array<i64: 1, 8, 32>}, {pipeline_mode = #tpu.pipeline_mode<synchronous>, transform_indices = @transform_1, window_bounds = array<i64: 3, 32, 16>}, {transform_indices = @transform_2, window_bounds = array<i64: 1, 8, 16>}]} {
    %c0 = arith.constant 0 : index
    %c0_0 = arith.constant 0 : index
    %c0_1 = arith.constant 0 : index
    %0 = vector.load %arg1[%c0, %c0_0, %c0_1] : memref<1x8x32xf32, #tpu.memory_space<vmem>>, vector<1x8x32xf32>
    %c0_2 = arith.constant 0 : index
    %c0_3 = arith.constant 0 : index
    %c0_4 = arith.constant 0 : index
    %1 = vector.load %arg2[%c0_2, %c0_3, %c0_4] : memref<3x32x16xf32, #tpu.memory_space<vmem>>, vector<1x32x16xf32>
    %2 = vector.shape_cast %1 : vector<1x32x16xf32> to vector<32x16xf32>
    "tpu.trace_start"() <{level = 10 : i32, message = "btc,ch->bth"}> : () -> ()
    %cst = arith.constant dense<0.000000e+00> : vector<1x8x16xf32>
    %3 = tpu.matmul %0, %2, %cst {dimension_numbers = #tpu.dot_dimension_numbers<[2], [0], [0, 1], [1], [0, 0, 0, 1, 1, 1], [], []>} : vector<1x8x32xf32>, vector<32x16xf32>, vector<1x8x16xf32> -> vector<1x8x16xf32>
    "tpu.trace_stop"() : () -> ()
    %c1 = arith.constant 1 : index
    %c0_5 = arith.constant 0 : index
    %c0_6 = arith.constant 0 : index
    %4 = vector.load %arg2[%c1, %c0_5, %c0_6] : memref<3x32x16xf32, #tpu.memory_space<vmem>>, vector<1x32x16xf32>
    %5 = vector.shape_cast %4 : vector<1x32x16xf32> to vector<32x16xf32>
    "tpu.trace_start"() <{level = 10 : i32, message = "btc,ch->bth"}> : () -> ()
    %cst_7 = arith.constant dense<0.000000e+00> : vector<1x8x16xf32>
    %6 = tpu.matmul %0, %5, %cst_7 {dimension_numbers = #tpu.dot_dimension_numbers<[2], [0], [0, 1], [1], [0, 0, 0, 1, 1, 1], [], []>} : vector<1x8x32xf32>, vector<32x16xf32>, vector<1x8x16xf32> -> vector<1x8x16xf32>
    "tpu.trace_stop"() : () -> ()
    %c2 = arith.constant 2 : index
    %c0_8 = arith.constant 0 : index
    %c0_9 = arith.constant 0 : index
    %7 = vector.load %arg2[%c2, %c0_8, %c0_9] : memref<3x32x16xf32, #tpu.memory_space<vmem>>, vector<1x32x16xf32>
    %8 = vector.shape_cast %7 : vector<1x32x16xf32> to vector<32x16xf32>
    "tpu.trace_start"() <{level = 10 : i32, message = "btc,ch->bth"}> : () -> ()
    %cst_10 = arith.constant dense<0.000000e+00> : vector<1x8x16xf32>
    %9 = tpu.matmul %0, %8, %cst_10 {dimension_numbers = #tpu.dot_dimension_numbers<[2], [0], [0, 1], [1], [0, 0, 0, 1, 1, 1], [], []>} : vector<1x8x32xf32>, vector<32x16xf32>, vector<1x8x16xf32> -> vector<1x8x16xf32>
    "tpu.trace_stop"() : () -> ()
    "tpu.trace_start"() <{level = 10 : i32, message = "bqh,bkh->bqk"}> : () -> ()
    %cst_11 = arith.constant dense<0.000000e+00> : vector<1x8x8xf32>
    %10 = tpu.matmul %3, %6, %cst_11 {dimension_numbers = #tpu.dot_dimension_numbers<[2], [2], [1], [1], [0, 0, 0, 1, 1, 1], [0], [0]>} : vector<1x8x16xf32>, vector<1x8x16xf32>, vector<1x8x8xf32> -> vector<1x8x8xf32>
    "tpu.trace_stop"() : () -> ()
    %cst_12 = arith.constant dense<0xFF800000> : vector<1x8xf32>
    %11 = vector.multi_reduction <maximumf>, %10, %cst_12 [2] : vector<1x8x8xf32> to vector<1x8xf32>
    %12 = vector.shape_cast %11 : vector<1x8xf32> to vector<1x8x1xf32>
    %13 = vector.broadcast %12 : vector<1x8x1xf32> to vector<1x8x8xf32>
    %14 = arith.subf %10, %13 : vector<1x8x8xf32>
    %15 = math.exp %14 : vector<1x8x8xf32>
    %cst_13 = arith.constant dense<0.000000e+00> : vector<1x8xf32>
    %16 = vector.multi_reduction <add>, %15, %cst_13 [2] : vector<1x8x8xf32> to vector<1x8xf32>
    %17 = vector.shape_cast %16 : vector<1x8xf32> to vector<1x8x1xf32>
    "tpu.trace_start"() <{level = 10 : i32, message = "bqk,bkh->bqh"}> : () -> ()
    %cst_14 = arith.constant dense<0.000000e+00> : vector<1x8x16xf32>
    %18 = tpu.matmul %15, %9, %cst_14 {dimension_numbers = #tpu.dot_dimension_numbers<[2], [1], [1], [2], [0, 0, 0, 1, 1, 2], [0], [0]>} : vector<1x8x8xf32>, vector<1x8x16xf32>, vector<1x8x16xf32> -> vector<1x8x16xf32>
    "tpu.trace_stop"() : () -> ()
    %19 = tpu.reciprocal %17 {approx = true} : vector<1x8x1xf32> -> vector<1x8x1xf32>
    %20 = vector.broadcast %19 : vector<1x8x1xf32> to vector<1x8x16xf32>
    %21 = arith.mulf %18, %20 : vector<1x8x16xf32>
    %c0_15 = arith.constant 0 : index
    %c0_16 = arith.constant 0 : index
    %c0_17 = arith.constant 0 : index
    %22 = vector.load %arg3[%c0_15, %c0_16, %c0_17] : memref<1x8x16xf32, #tpu.memory_space<vmem>>, vector<1x8x16xf32>
    tpu.vector_store %arg3[%c0_15, %c0_16, %c0_17], %21 {strides = array<i32>} : memref<1x8x16xf32, #tpu.memory_space<vmem>>, vector<1x8x16xf32>,
    return
  }
  func.func @transform_0(%arg0: i32) -> (i32, i32, i32) {
    %c0_i32 = arith.constant 0 : i32
    %c0_i32_0 = arith.constant 0 : i32
    %c0_i32_1 = arith.constant 0 : i32
    return %arg0, %c0_i32, %c0_i32_0 : i32, i32, i32
  }
  func.func @transform_1(%arg0: i32) -> (i32, i32, i32) {
    %c0_i32 = arith.constant 0 : i32
    %c0_i32_0 = arith.constant 0 : i32
    %c0_i32_1 = arith.constant 0 : i32
    %c0_i32_2 = arith.constant 0 : i32
    return %c0_i32, %c0_i32_0, %c0_i32_1 : i32, i32, i32
  }
  func.func @transform_2(%arg0: i32) -> (i32, i32, i32) {
    %c0_i32 = arith.constant 0 : i32
    %c0_i32_0 = arith.constant 0 : i32
    %c0_i32_1 = arith.constant 0 : i32
    return %arg0, %c0_i32, %c0_i32_0 : i32, i32, i32
  }
}

</mosaic_0001>

<bundles_post_ra>
// kernel: tpu_custom_call.1
= control target key start
LH: loop header
LB: loop body
LE: loop exit
PB: predicated region body
PF: predicated region fallthrough
CT: control target
= control target key end

     0   :  { %7 = vsyncpa [#allocation3], 0  ;;  %s955_s0 = inlined_call_operand.vmem [shape: f32[2,8,32], index: 0, kind: input, shape index: {}]   ;;  %s956_s1 = inlined_call_operand.vmem [shape: f32[3,32,16], index: 1, kind: input, shape index: {}]   ;;  %s957_s2 = inlined_call_operand.hbm [shape: f32[2,8,16], index: 2, kind: output, shape index: {}]  }
   0x1   :  { %9 = vsyncpa [#allocation3 + $0x1], 0  ;;  %s815_s9 = smov 0   ;;  %s817_s10 = smov 0  }
   0x2   :  { %s819_s11 = smov 0   ;;  %s821_s12 = smov 0  }
   0x3 LB: > { %s836_s13 = sadd.s32 4294967295, %s795_s12   ;;  %s604_s14 = sadd.s32 4294967294, %s795_s12   ;;  %s795_s12 = sphi %s821_s12, %s963_s12   ;;  %s791_s11 = sphi %s819_s11, %s962_s11   ;;  %s787_s10 = sphi %s817_s10, %s961_s10   ;;  %s783_s9 = sphi %s815_s9, %s960_s9  }
   0x4   : > { %s840_s15 = sadd.s32 1, %s795_s12   ;;  %s69_s16 = sadd.s32 1, %s791_s11 }
   0x5   : > { %s66_s17 = ssub.s32 %s795_s12, %s840_s15  ;;  %p79_p0 = scmp.ne.s32.totalorder %s791_s11, %s787_s10 }
   0x6   : > { %p67_p1 = scmp.eq.s32.totalorder %s66_s17, 0  ;;  %p80_p2 = scmp.eq.s32.totalorder %s836_s13, 1 }
   0x7   : > { %p85_p3 = scmp.ne.s32.totalorder %s787_s10, %s783_s9  ;;  %p86_p4 = scmp.eq.s32.totalorder %s604_s14, 1 }
   0x8   : > { %s851_s18 = scalar_select %p67_p1, %s791_s11, %s69_s16  }
   0x9   : > { %p853_p5 = por %p80_p2, %p79_p0  ;;  %p857_p6 = por %p86_p4, %p85_p3 }
   0xa   : > { %p607_p7 = scmp.ge.s32.totalorder %s795_s12, 1  ;;  %p114_p8 = scmp.lt.s32.totalorder %s795_s12, 3 }
   0xc   : > { %p115_p9 = pnand %p607_p7, %p114_p8 }
   0xd   : > { %p135_p10 = scmp.lt.s32.totalorder (!%p115_p9), %s836_s13, 1  ;;  %s132_s3 = sand.u32 (!%p115_p9), 1, %s787_s10  }
   0xe   : > { %118 = sbr.rel (%p115_p9) target bundleno = 782 (0x30e), region = 28  ;;  %s608_s4 = sshll.u32 (!%p115_p9), %s132_s3, 3 }
   0xf   : > { %s625_s5 = sshll.u32 (!%p115_p9), %s836_s13, 7 }
  0x10   : > { %s919_s16 = scalar_lea.hbm (!%p115_p9), %s957_s2, %s625_s5 }
  0x13   : > { %v614_v0 = vld [vmem:[%s956_s1 + $0x38] sm:$0xff]  ;;  %v797_v2 = vmov 0.0   ;;  %v613_v3 = vld [vmem:[%s956_s1 + $0x30] sm:$0xff]  ;;  %s136_s29 = scalar_select %p135_p10, %s836_s13, 1  ;;  %v612_v5 = vld [vmem:[%s956_s1 + $0x28] sm:$0xff]  ;;  %vm144_vm0 = vcmask 261120  }
  0x14   : > { %v143_v1 = vld [vmem:[%s956_s1 + $0x18] sm:$0xff]  ;;  %658 = vmatprep.subr.mxu1 %v797_v2  ;;  %647 = vmatprep.subr.mxu0 %v797_v2  ;;  %v142_v4 = vld [vmem:[%s956_s1 + $0x10] sm:$0xff]  ;;  %v141_v6 = vld [vmem:[%s956_s1 + $0x8] sm:$0xff]  ;;  %vm798_vm1 = vmmov 0   ;;  %vm368_vm2 = vcmask 130048   ;;  %vm445_vm3 = vcmask 64512  }
  0x15   : > { %659 = vmatpush3.msra.mxu1 %v614_v0  ;;  %648 = vmatpush3.msra.mxu0 %v143_v1  ;;  %s609_s6 = sshll.u32 %s136_s29, 3  ;;  %v611_v7 = vld [vmem:[%s956_s1 + $0x20] sm:$0xff]  ;;  %v619_v10 = vld [vmem:[%s956_s1 + $0x58] sm:$0xff]  ;;  %v618_v11 = vld [vmem:[%s956_s1 + $0x50] sm:$0xff]  ;;  %s799_s13 = smov [#allocation2]  }
  0x16   : > { %660 = vmatprep.subr.mxu1 %v797_v2  ;;  %649 = vmatprep.subr.mxu0 %v797_v2  ;;  %s138_s17 = scalar_lea.vmem %s955_s0, %s609_s6  ;;  %v140_v9 = vld [vmem:[%s956_s1] sm:$0xff]  ;;  %v617_v12 = vld [vmem:[%s956_s1 + $0x48] sm:$0xff]  ;;  %s134_s6 = scalar_lea.vmem [#allocation2], %s608_s4 }
  0x17   : > { %661 = vmatpush3.msra.mxu1 %v613_v3  ;;  %650 = vmatpush3.msra.mxu0 %v142_v4  ;;  %v139_v8 = vld [vmem:[%s138_s17] sm:$0xff]  ;;  %s545_s7 = sshll.u32 %s134_s6, 4  ;;  %s532_s17 = scalar_lea.sflag [#allocation3], %s132_s3  ;;  %s546_s7 = int_to_ptr.vmem [resolvable:$true] %s545_s7 }
  0x18   : > { %662 = vmatprep.subr.mxu1 %v797_v2  ;;  %651 = vmatprep.subr.mxu0 %v797_v2  ;;  %v616_v13 = vld [vmem:[%s956_s1 + $0x40] sm:$0xff]  ;;  %s735_s21 = scalar_lea.vmem %s546_s7, 128  ;;  %s739_s22 = sshll.u32 %s799_s13, 4  ;;  %s740_s22 = int_to_ptr.vmem [resolvable:$false] %s739_s22 }
  0x19   : > { %663 = vmatpush3.msra.mxu1 %v612_v5  ;;  %652 = vmatpush3.msra.mxu0 %v141_v6  ;;  %p736_p11 = scmp.ne.s32.totalorder %s546_s7, %s735_s21  ;;  %s741_s23 = scalar_lea.vmem %s740_s22, 256 }
  0x1a   : > { %664 = vmatprep.subr.mxu1 %v797_v2  ;;  %666 = vmatprep.mubr.msk.f32.mxu1 %vm798_vm1, %v797_v2  ;;  %p742_p0 = scmp.lt.s32.totalorder %s546_s7, %s740_s22  ;;  %p743_p1 = scmp.lt.s32.totalorder %s741_s23, %s735_s21 }
  0x1b   : > { %665 = vmatpush3.msra.mxu1 %v611_v7  ;;  %653 = vmatprep.subr.mxu0 %v797_v2  ;;  %p737_p12 = pnand %p736_p11, %p853_p5 }
  0x1c   : > { %667 = vmatmul.mubr.msk.f32.vlgmr.msra.gmra.mxu1 %vm144_vm0, %v139_v8  ;;  %654 = vmatpush3.msra.mxu0 %v140_v9  ;;  %p744_p2 = por %p743_p1, %p742_p0 }
  0x1d   : > { %655 = vmatprep.mubr.msk.f32.mxu0 %vm798_vm1, %v797_v2  ;;  %680 = vmatprep.subr.mxu1 %v797_v2  ;;  %p738_p13 = pneg %p737_p12 }
  0x1e   : > { %656 = vmatmul.mubr.msk.f32.vlgmr.msra.gmra.mxu0 %vm144_vm0, %v139_v8  ;;  %682 = vmatprep.mubr.msk.f32.mxu1 %vm798_vm1, %v797_v2 }
  0x1f   : > { %669 = vmatprep.subr.mxu0 %v797_v2  ;;  %677 = vmatprep.mubr.msk.f32.mxu0 %vm798_vm1, %v797_v2  ;;  %p745_p3 = pnand %p744_p2, %p738_p13 }
  0x20   : > { %670 = vmatpush3.msra.mxu0 %v619_v10 }
  0x21   : > { %671 = vmatprep.subr.mxu0 %v797_v2 }
  0x22   : > { %672 = vmatpush3.msra.mxu0 %v618_v11 }
  0x23   : > { %673 = vmatprep.subr.mxu0 %v797_v2 }
  0x24   : > { %674 = vmatpush3.msra.mxu0 %v617_v12 }
  0x25   : > { %675 = vmatprep.subr.mxu0 %v797_v2 }
  0x26   : > { %676 = vmatpush3.msra.mxu0 %v616_v13 }
  0x27   : > { %678 = vmatmul.mubr.msk.f32.vlgmr.msra.gmra.mxu0 %vm144_vm0, %v139_v8 }
  0xdc   : > { %v289_v14 = vpop.f32.mrf.mxu1 }
  0xdd   : > { %681 = vmatpush3.xpose.msk.msra.mxu1 %vm368_vm2, %v289_v14 }
  0xde   : > { %v214_v15 = vpop.f32.mrf.mxu0  ;;  %v668_v16 = vpop.f32.mrf.mxu1  ;;  %685 = vmatprep.subr.mxu1 %v797_v2 }
  0xe0   : > { %v657_v17 = vpop.f32.mrf.mxu0  ;;  %683 = vmatmul.mubr.msk.f32.vlgmr.msra.gmra.mxu1 %vm368_vm2, %v214_v15 }
  0xe1   : > { %687 = vmatprep.mubr.msk.f32.mxu1 %vm798_vm1, %v797_v2 }
  0xe7   : > { %v364_v21 = vpop.f32.mrf.mxu0 }
  0xe8   : > { %686 = vmatpush3.msra.mxu1 %v364_v21 }
  0xe9   : > { %v679_v22 = vpop.f32.mrf.mxu0 }
 0x1a0   : > { %v441_v18 = vpop.f32.mrf.mxu1 }
 0x1a1   : > { %v446_v19 = vsel %vm445_vm3, %v441_v18, -inf }
 0x1a2   : > { %447 = vmax.xlane.f32.xlu0 %v446_v19  ;;  %v684_v20 = vpop.f32.mrf.mxu1 }
 0x22b   : > { %v448_v23 = vpop.xlane.xlu0 %447 }
 0x22c   : > { %v449_v24 = vsub.f32 %v441_v18, %v448_v23 }
 0x22e   : > { %v450_v25 = vmul.f32 1.442695, %v449_v24 }
 0x230   : > { %731 = vpow2.f32 %v450_v25 }
 0x23d   : > { %v732_v26 = vpop.eup %731 }
 0x23e   : > { %688 = vmatmul.mubr.msk.f32.vlgmr.msra.gmra.mxu1 %vm445_vm3, %v732_v26  ;;  %v452_v27 = vsel %vm445_vm3, %v732_v26, 0.0 }
 0x23f   : > { %453 = vadd.xlane.f32.xlu0 %v452_v27 }
 0x2c8   : > { %v454_v28 = vpop.xlane.xlu0 %453 }
 0x2c9   : > { %733 = vrcp.f32 %v454_v28 }
 0x2d6   : > { %v734_v29 = vpop.eup %733 }
 0x2fe   : > { %v524_v30 = vpop.f32.mrf.mxu1 }
 0x2ff   : > { %v529_v31 = vmul.f32 %v734_v29, %v524_v30 }
 0x300   : > { %v689_v32 = vpop.f32.mrf.mxu1 }
 0x301   : > { %530 = vst.msk [vmem:[%s134_s6] sm:$0xff] %vm368_vm2, %v529_v31 }
 0x302   : > { %748 = shalt.err (!%p745_p3)
}
 0x303   : > { %s749_s24 = scalar_lea.hbm %s919_s16, 128  ;;  %s753_s27 = scalar_lea.hbm %s957_s2, 256 }
 0x304   : > { %p750_p4 = scmp.ne.s32.totalorder %s919_s16, %s749_s24  ;;  %p754_p9 = scmp.lt.s32.totalorder %s919_s16, %s957_s2 }
 0x305   : > { %p755_p10 = scmp.lt.s32.totalorder %s753_s27, %s749_s24 }
 0x306   : > { %p751_p7 = pnand %p750_p4, %p853_p5 }
 0x307   : > { %p756_p11 = por %p755_p10, %p754_p9 }
 0x308   : > { %p752_p8 = pneg %p751_p7 }
 0x30a   : > { %p757_p12 = pnand %p756_p11, %p752_p8 }
 0x30c   : > { %760 = shalt.err (!%p757_p12)
}
 0x30d   : > { %690 = dma.vmem_to_hbm [thread:$0]  (%p853_p5), %s546_s7, 128, %s919_s16, %s532_s17  }
 0x30e PF: > { %p696_p13 = scmp.ge.s32.totalorder %s795_s12, 2  ;;  %s557_s30 = sand.u32 1, %s783_s9  }
 0x30f   : > { %s558_s3 = scalar_lea.sflag [#allocation3], %s557_s30 }
 0x310   : > { %p693_p0 = pnand %p696_p13, %p857_p6 }
 0x312   : > { %p694_p1 = pneg %p693_p0 }
 0x314   : > { %778 = dma.done.wait (%p694_p1), %s558_s3, 128  }
 0x315   : > { %780 = vsyncadd (%p694_p1), %s558_s3, 4294967168  ;;  %p12_p2 = scmp.ge.s32.totalorder %s840_s15, 4   ;;  %s960_s9 = smov %s787_s10 }
 0x316   : > { %s961_s10 = smov %s791_s11  ;;  %s962_s11 = smov %s851_s18 }
 0x317   : > { %s963_s12 = smov %s840_s15  ;;  %14 = sbr.rel (!%p12_p2) target bundleno = 3 (0x3), region = 65 }
 0x31c   :  { %563 = vsyncpa [#allocation3], 1 }
 0x31d   :  { %565 = vsyncpa [#allocation3 + $0x1], 1 }

</bundles_post_ra>
